<compile_context>
chip_gen: v7x
topology: tpu7x:2x2x1
jax: 0.10.0
libtpu: 0.0.40
codegen_flags: <defaults>
</compile_context>

<pallas_src>
import functools

import jax
import jax.numpy as jnp
from jax.experimental import pallas as pl
from jax.experimental.pallas import tpu as pltpu

LN_EPS = 1e-5  # PyTorch nn.LayerNorm default


def _round_up(n, m):
    return (n + m - 1) // m * m


def _ln_normalize(x_f32, inv_d):
    """One-pass LayerNorm statistics; gamma/beta are folded into W/bias outside."""
    sx = jnp.sum(x_f32, axis=-1, keepdims=True)
    sxx = jnp.sum(x_f32 * x_f32, axis=-1, keepdims=True)
    mean = sx * inv_d
    var = jnp.maximum(sxx * inv_d - mean * mean, 0.0)
    inv = jax.lax.rsqrt(var + LN_EPS)
    return (x_f32 - mean) * inv


def _pre_ln_linear_kernel(x_ref, w_ref, bias_ref, o_ref, *, inv_d):
    # Resident-weight path.
    # x: (tm, Dp); w: (Dp, Dp) = gamma-folded W^T; bias: (1, Dp) f32.
    # Padded x columns are zero, so they contribute nothing to sum_x / sum_x2;
    # padded rows of w_fused are zero, so the (non-zero) padded columns of the
    # normalized activations never reach the output.
    y = _ln_normalize(x_ref[...].astype(jnp.float32), inv_d).astype(w_ref.dtype)
    acc = jnp.dot(y, w_ref[...], preferred_element_type=jnp.float32)
    o_ref[...] = (acc + bias_ref[...]).astype(o_ref.dtype)


def _pre_ln_linear_col_kernel(x_ref, w_ref, bias_ref, o_ref, y_ref, *, inv_d):
    # Output-column-tiled path.
    # x: (tm, Dp); w: (Dp, tn); bias: (1, tn); out: (tm, tn); y_ref: (tm, Dp) scratch.
    # LN(x) is computed once per row tile (j == 0) and reused for every column tile.
    @pl.when(pl.program_id(1) == 0)
    def _():
        y_ref[...] = _ln_normalize(
            x_ref[...].astype(jnp.float32), inv_d).astype(y_ref.dtype)

    acc = jnp.dot(y_ref[...], w_ref[...], preferred_element_type=jnp.float32)
    o_ref[...] = (acc + bias_ref[...]).astype(o_ref.dtype)


def _vmem_capacity_bytes():
    try:
        return int(getattr(pltpu.get_tpu_info(), "vmem_capacity_bytes", 64 << 20))
    except Exception:
        return 64 << 20  # conservative default (v7x per-TC VMEM)


def pre_layer_norm(x, gamma, beta, w, bias, *, tile_rows=256, tile_cols=512,
                   matmul_dtype=jnp.bfloat16, force_column_tiling=False):
    """x: [B, S, D] -> fn(LayerNorm(x)) with fn = Linear(D, D) (weight w, bias).

    matmul_dtype: dtype of the MXU operands / resident weight (default bfloat16
    fast path; pass jnp.float32 for strict precision).  Accumulation is always f32.
    """
    B, S, D = x.shape
    R = B * S
    if matmul_dtype is None:
        matmul_dtype = w.dtype
    f32 = jnp.float32

    # --- Row / lane padding (lane-dense stores, clean MXU tiles). ---
    D_pad = _round_up(D, 128)
    if R >= tile_rows:
        tm = tile_rows                     # multiple of 256 keeps the v6e/v7x MXU full
    elif R > 128:
        tm = _round_up(R, 128)
    else:
        tm = _round_up(R, 8)               # tiny inputs: single small tile
    R_pad = _round_up(R, tm)

    x2 = x.reshape(R, D)
    if R_pad != R or D_pad != D:
        x2 = jnp.pad(x2, ((0, R_pad - R), (0, D_pad - D)))

    # --- Fold the LayerNorm affine into the linear (fold in f32, then cast). ---
    #   fn(LN(x)) = (xc*inv*gamma + beta) @ W^T + b
    #             = (xc*inv) @ (gamma[:,None] * W^T) + (beta @ W^T + b)
    w_t = w.astype(f32).T                                    # (D_in, D_out)
    w_fused = (gamma.astype(f32)[:, None] * w_t).astype(matmul_dtype)
    bias_fused = (beta.astype(f32) @ w_t + bias.astype(f32)).reshape(1, D)
    if D_pad != D:
        w_fused = jnp.pad(w_fused, ((0, D_pad - D), (0, D_pad - D)))
        bias_fused = jnp.pad(bias_fused, ((0, 0), (0, D_pad - D)))

    # --- VMEM accounting / path selection (per-generation capacity). ---
    w_item = jnp.dtype(matmul_dtype).itemsize
    x_item = jnp.dtype(x.dtype).itemsize
    o_item = x_item
    capacity = _vmem_capacity_bytes()
    budget = capacity - (12 << 20)                 # headroom for compiler scratch/sems
    io_bytes = 2 * tm * D_pad * (x_item + o_item)  # double-buffered x / out tiles
    w_res_bytes = D_pad * D_pad * w_item           # single-buffered resident weight
    resident_req = w_res_bytes + io_bytes + D_pad * 4 + (2 << 20)
    use_resident = (not force_column_tiling) and resident_req <= budget

    kernel_common = dict(inv_d=1.0 / float(D))
    out_shape = jax.ShapeDtypeStruct((R_pad, D_pad), x.dtype)

    if use_resident:
        # Generous ceiling (covers a second weight buffer if single-buffering is
        # not honored), capped below physical capacity.
        vmem_limit = int(min(capacity - (8 << 20),
                             max(32 << 20, resident_req + w_res_bytes + (4 << 20))))

        def resident_call(single_buffer_consts):
            const_kw = ({"pipeline_mode": pl.Buffered(1)}
                        if single_buffer_consts else {})
            return pl.pallas_call(
                functools.partial(_pre_ln_linear_kernel, **kernel_common),
                out_shape=out_shape,
                grid_spec=pltpu.PrefetchScalarGridSpec(
                    num_scalar_prefetch=0,
                    grid=(R_pad // tm,),
                    in_specs=[
                        pl.BlockSpec((tm, D_pad), lambda i: (i, 0)),      # x rows
                        pl.BlockSpec((D_pad, D_pad), lambda i: (0, 0),
                                     **const_kw),                          # resident W
                        pl.BlockSpec((1, D_pad), lambda i: (0, 0),
                                     **const_kw),                          # fused bias
                    ],
                    out_specs=pl.BlockSpec((tm, D_pad), lambda i: (i, 0)),
                ),
                compiler_params=pltpu.CompilerParams(
                    dimension_semantics=("parallel",),
                    vmem_limit_bytes=vmem_limit,
                ),
            )(x2, w_fused, bias_fused)

        try:
            out = resident_call(True)     # single-buffer the constant weight/bias
        except Exception:
            # Compatibility fallback: some jax versions reject pl.Buffered(1) on a
            # top-level pallas_call BlockSpec; default 2-deep buffering still works.
            out = resident_call(False)
    else:
        # Output-column tiling: weight blocked (Dp, tn); LN(x) scratch reused over j.
        tn = min(tile_cols, D_pad)
        while D_pad % tn:                  # D_pad is a multiple of 128, so tn >= 128
            tn -= 128
        col_req = (2 * D_pad * tn * w_item        # double-buffered weight column block
                   + 2 * tm * D_pad * x_item      # x tiles
                   + 2 * tm * tn * o_item         # out tiles
                   + 2 * tn * 4                   # bias block
                   + tm * D_pad * w_item          # LN scratch
                   + (2 << 20))
        if col_req > budget:
            raise ValueError(
                f"column-tiled PreLayerNorm needs ~{col_req >> 20} MiB VMEM but only "
                f"~{max(budget, 0) >> 20} MiB is available; reduce tile_rows/tile_cols.")
        vmem_limit = int(min(capacity - (8 << 20), max(32 << 20, col_req + (4 << 20))))

        out = pl.pallas_call(
            functools.partial(_pre_ln_linear_col_kernel, **kernel_common),
            out_shape=out_shape,
            grid_spec=pltpu.PrefetchScalarGridSpec(
                num_scalar_prefetch=0,
                grid=(R_pad // tm, D_pad // tn),
                in_specs=[
                    pl.BlockSpec((tm, D_pad), lambda i, j: (i, 0)),   # x rows (const in j)
                    pl.BlockSpec((D_pad, tn), lambda i, j: (0, j)),   # W column block
                    pl.BlockSpec((1, tn), lambda i, j: (0, j)),       # fused bias block
                ],
                out_specs=pl.BlockSpec((tm, tn), lambda i, j: (i, j)),
                scratch_shapes=[pltpu.VMEM((tm, D_pad), matmul_dtype)],
            ),
            compiler_params=pltpu.CompilerParams(
                dimension_semantics=("parallel", "arbitrary"),
                vmem_limit_bytes=vmem_limit,
            ),
        )(x2, w_fused, bias_fused)

    return out[:R, :D].reshape(B, S, D)


def _reference(x, gamma, beta, w, bias):
    xf = x.astype(jnp.float32)
    mean = jnp.mean(xf, axis=-1, keepdims=True)
    var = jnp.mean((xf - mean) ** 2, axis=-1, keepdims=True)
    y = (xf - mean) * jax.lax.rsqrt(var + LN_EPS) * gamma.astype(jnp.float32) \
        + beta.astype(jnp.float32)
    out = y @ w.T.astype(jnp.float32) + bias.astype(jnp.float32)
    return out.astype(x.dtype)


if __name__ == "__main__":
    key = jax.random.PRNGKey(0)

    def make_inputs(k, B, S, D):
        kx, kw, kb, kg, kbe = jax.random.split(k, 5)
        x = jax.random.normal(kx, (B, S, D), dtype=jnp.float32)
        # Non-trivial LN affine so the gamma/beta -> W/bias fold is actually exercised.
        gamma = 1.0 + 0.1 * jax.random.normal(kg, (D,), dtype=jnp.float32)
        beta = 0.1 * jax.random.normal(kbe, (D,), dtype=jnp.float32)
        bound = 1.0 / (D ** 0.5)
        w = jax.random.uniform(kw, (D, D), jnp.float32, -bound, bound)
        bias = jax.random.uniform(kb, (D,), jnp.float32, -bound, bound)
        return x, gamma, beta, w, bias

    k1, k2 = jax.random.split(key)

    # 1) Strict f32 path (explicit f32 MXU operands), resident-weight kernel.
    B, S, D = 2, 8, 32
    x, gamma, beta, w, bias = make_inputs(k1, B, S, D)
    out = jax.block_until_ready(
        pre_layer_norm(x, gamma, beta, w, bias, matmul_dtype=jnp.float32))
    ref = _reference(x, gamma, beta, w, bias)
    assert out.shape == (B, S, D)
    assert jnp.allclose(out, ref, atol=2e-4, rtol=2e-4), "f32 resident path mismatch"

    # 2) Default bf16 MXU fast path (f32 accumulation), resident-weight kernel.
    out16 = jax.block_until_ready(pre_layer_norm(x, gamma, beta, w, bias))
    assert out16.shape == (B, S, D)
    assert jnp.allclose(out16, ref, atol=5e-2, rtol=5e-2), "bf16 fast path mismatch"

    # 3) Output-column-tiled path (LN scratch reused across 2 column tiles).
    B2, S2, D2 = 2, 8, 192
    xc, gammac, betac, wc, biasc = make_inputs(k2, B2, S2, D2)
    outc = jax.block_until_ready(
        pre_layer_norm(xc, gammac, betac, wc, biasc, matmul_dtype=jnp.float32,
                       force_column_tiling=True, tile_cols=128))
    refc = _reference(xc, gammac, betac, wc, biasc)
    assert outc.shape == (B2, S2, D2)
    assert jnp.allclose(outc, refc, atol=5e-4, rtol=5e-4), "column-tiled path mismatch"

    print("KERNEL_OK")
</pallas_src>

<mosaic_0001>
module attributes {stable_mosaic.version = 11 : i64} {
  func.func @_pre_ln_linear_kernel(%arg0: i32, %arg1: memref<16x128xf32, #tpu.memory_space<vmem>>, %arg2: memref<128x128xf32, #tpu.memory_space<vmem>>, %arg3: memref<1x128xf32, #tpu.memory_space<vmem>>, %arg4: memref<16x128xf32, #tpu.memory_space<vmem>>) attributes {dimension_semantics = [#tpu.dimension_semantics<parallel>], iteration_bounds = array<i64: 1>, scalar_prefetch = 0 : i64, scratch_operands = 0 : i64, tpu.core_type = #tpu.core_type<tc>, window_params = [{transform_indices = @transform_0, window_bounds = array<i64: 16, 128>}, {pipeline_mode = #tpu.pipeline_mode<synchronous>, transform_indices = @transform_1, window_bounds = array<i64: 128, 128>}, {pipeline_mode = #tpu.pipeline_mode<synchronous>, transform_indices = @transform_2, window_bounds = array<i64: 1, 128>}, {transform_indices = @transform_3, window_bounds = array<i64: 16, 128>}]} {
    %c0 = arith.constant 0 : index
    %c0_0 = arith.constant 0 : index
    %0 = vector.load %arg1[%c0, %c0_0] : memref<16x128xf32, #tpu.memory_space<vmem>>, vector<16x128xf32>
    %cst = arith.constant dense<0.000000e+00> : vector<16xf32>
    %1 = vector.multi_reduction <add>, %0, %cst [1] : vector<16x128xf32> to vector<16xf32>
    %2 = vector.shape_cast %1 : vector<16xf32> to vector<16x1xf32>
    %3 = arith.mulf %0, %0 : vector<16x128xf32>
    %cst_1 = arith.constant dense<0.000000e+00> : vector<16xf32>
    %4 = vector.multi_reduction <add>, %3, %cst_1 [1] : vector<16x128xf32> to vector<16xf32>
    %5 = vector.shape_cast %4 : vector<16xf32> to vector<16x1xf32>
    %cst_2 = arith.constant 3.125000e-02 : f32
    %6 = vector.broadcast %cst_2 : f32 to vector<16x1xf32>
    %7 = arith.mulf %2, %6 : vector<16x1xf32>
    %cst_3 = arith.constant 3.125000e-02 : f32
    %8 = vector.broadcast %cst_3 : f32 to vector<16x1xf32>
    %9 = arith.mulf %5, %8 : vector<16x1xf32>
    %10 = arith.mulf %7, %7 : vector<16x1xf32>
    %11 = arith.subf %9, %10 : vector<16x1xf32>
    %cst_4 = arith.constant 0.000000e+00 : f32
    %12 = vector.broadcast %cst_4 : f32 to vector<16x1xf32>
    %13 = arith.maximumf %11, %12 : vector<16x1xf32>
    %cst_5 = arith.constant 9.99999974E-6 : f32
    %14 = vector.broadcast %cst_5 : f32 to vector<16x1xf32>
    %15 = arith.addf %13, %14 : vector<16x1xf32>
    %16 = math.rsqrt %15 : vector<16x1xf32>
    %17 = vector.broadcast %7 : vector<16x1xf32> to vector<16x128xf32>
    %18 = arith.subf %0, %17 : vector<16x128xf32>
    %19 = vector.broadcast %16 : vector<16x1xf32> to vector<16x128xf32>
    %20 = arith.mulf %18, %19 : vector<16x128xf32>
    %c0_6 = arith.constant 0 : index
    %c0_7 = arith.constant 0 : index
    %21 = vector.load %arg2[%c0_6, %c0_7] : memref<128x128xf32, #tpu.memory_space<vmem>>, vector<128x128xf32>
    %cst_8 = arith.constant dense<0.000000e+00> : vector<16x128xf32>
    %22 = tpu.matmul %20, %21, %cst_8 {dimension_numbers = #tpu.dot_dimension_numbers<[1], [0], [0], [1], [0, 0, 1, 1], [], []>} : vector<16x128xf32>, vector<128x128xf32>, vector<16x128xf32> -> vector<16x128xf32>
    %c0_9 = arith.constant 0 : index
    %c0_10 = arith.constant 0 : index
    %23 = vector.load %arg3[%c0_9, %c0_10] : memref<1x128xf32, #tpu.memory_space<vmem>>, vector<1x128xf32>
    %24 = vector.broadcast %23 : vector<1x128xf32> to vector<16x128xf32>
    %25 = arith.addf %22, %24 : vector<16x128xf32>
    %c0_11 = arith.constant 0 : index
    %c0_12 = arith.constant 0 : index
    %26 = vector.load %arg4[%c0_11, %c0_12] : memref<16x128xf32, #tpu.memory_space<vmem>>, vector<16x128xf32>
    tpu.vector_store %arg4[%c0_11, %c0_12], %25 {strides = array<i32>} : memref<16x128xf32, #tpu.memory_space<vmem>>, vector<16x128xf32>,
    return
  }
  func.func @transform_0(%arg0: i32) -> (i32, i32) {
    %c0_i32 = arith.constant 0 : i32
    %c0_i32_0 = arith.constant 0 : i32
    return %arg0, %c0_i32 : i32, i32
  }
  func.func @transform_1(%arg0: i32) -> (i32, i32) {
    %c0_i32 = arith.constant 0 : i32
    %c0_i32_0 = arith.constant 0 : i32
    %c0_i32_1 = arith.constant 0 : i32
    return %c0_i32, %c0_i32_0 : i32, i32
  }
  func.func @transform_2(%arg0: i32) -> (i32, i32) {
    %c0_i32 = arith.constant 0 : i32
    %c0_i32_0 = arith.constant 0 : i32
    %c0_i32_1 = arith.constant 0 : i32
    return %c0_i32, %c0_i32_0 : i32, i32
  }
  func.func @transform_3(%arg0: i32) -> (i32, i32) {
    %c0_i32 = arith.constant 0 : i32
    %c0_i32_0 = arith.constant 0 : i32
    return %arg0, %c0_i32 : i32, i32
  }
}

module attributes {stable_mosaic.version = 11 : i64} {
  func.func @_pre_ln_linear_kernel(%arg0: i32, %arg1: memref<16x128xf32, #tpu.memory_space<vmem>>, %arg2: memref<128x128xf32, #tpu.memory_space<vmem>>, %arg3: memref<1x128xf32, #tpu.memory_space<vmem>>, %arg4: memref<16x128xf32, #tpu.memory_space<vmem>>) attributes {dimension_semantics = [#tpu.dimension_semantics<parallel>], iteration_bounds = array<i64: 1>, scalar_prefetch = 0 : i64, scratch_operands = 0 : i64, tpu.core_type = #tpu.core_type<tc>, window_params = [{transform_indices = @transform_0, window_bounds = array<i64: 16, 128>}, {pipeline_mode = #tpu.pipeline_mode<synchronous>, transform_indices = @transform_1, window_bounds = array<i64: 128, 128>}, {pipeline_mode = #tpu.pipeline_mode<synchronous>, transform_indices = @transform_2, window_bounds = array<i64: 1, 128>}, {transform_indices = @transform_3, window_bounds = array<i64: 16, 128>}]} {
    %c0 = arith.constant 0 : index
    %c0_0 = arith.constant 0 : index
    %0 = vector.load %arg1[%c0, %c0_0] : memref<16x128xf32, #tpu.memory_space<vmem>>, vector<16x128xf32>
    %cst = arith.constant dense<0.000000e+00> : vector<16xf32>
    %1 = vector.multi_reduction <add>, %0, %cst [1] : vector<16x128xf32> to vector<16xf32>
    %2 = vector.shape_cast %1 : vector<16xf32> to vector<16x1xf32>
    %3 = arith.mulf %0, %0 : vector<16x128xf32>
    %cst_1 = arith.constant dense<0.000000e+00> : vector<16xf32>
    %4 = vector.multi_reduction <add>, %3, %cst_1 [1] : vector<16x128xf32> to vector<16xf32>
    %5 = vector.shape_cast %4 : vector<16xf32> to vector<16x1xf32>
    %cst_2 = arith.constant 3.125000e-02 : f32
    %6 = vector.broadcast %cst_2 : f32 to vector<16x1xf32>
    %7 = arith.mulf %2, %6 : vector<16x1xf32>
    %cst_3 = arith.constant 3.125000e-02 : f32
    %8 = vector.broadcast %cst_3 : f32 to vector<16x1xf32>
    %9 = arith.mulf %5, %8 : vector<16x1xf32>
    %10 = arith.mulf %7, %7 : vector<16x1xf32>
    %11 = arith.subf %9, %10 : vector<16x1xf32>
    %cst_4 = arith.constant 0.000000e+00 : f32
    %12 = vector.broadcast %cst_4 : f32 to vector<16x1xf32>
    %13 = arith.maximumf %11, %12 : vector<16x1xf32>
    %cst_5 = arith.constant 9.99999974E-6 : f32
    %14 = vector.broadcast %cst_5 : f32 to vector<16x1xf32>
    %15 = arith.addf %13, %14 : vector<16x1xf32>
    %16 = math.rsqrt %15 : vector<16x1xf32>
    %17 = vector.broadcast %7 : vector<16x1xf32> to vector<16x128xf32>
    %18 = arith.subf %0, %17 : vector<16x128xf32>
    %19 = vector.broadcast %16 : vector<16x1xf32> to vector<16x128xf32>
    %20 = arith.mulf %18, %19 : vector<16x128xf32>
    %c0_6 = arith.constant 0 : index
    %c0_7 = arith.constant 0 : index
    %21 = vector.load %arg2[%c0_6, %c0_7] : memref<128x128xf32, #tpu.memory_space<vmem>>, vector<128x128xf32>
    %cst_8 = arith.constant dense<0.000000e+00> : vector<16x128xf32>
    %22 = tpu.matmul %20, %21, %cst_8 {dimension_numbers = #tpu.dot_dimension_numbers<[1], [0], [0], [1], [0, 0, 1, 1], [], []>} : vector<16x128xf32>, vector<128x128xf32>, vector<16x128xf32> -> vector<16x128xf32>
    %c0_9 = arith.constant 0 : index
    %c0_10 = arith.constant 0 : index
    %23 = vector.load %arg3[%c0_9, %c0_10] : memref<1x128xf32, #tpu.memory_space<vmem>>, vector<1x128xf32>
    %24 = vector.broadcast %23 : vector<1x128xf32> to vector<16x128xf32>
    %25 = arith.addf %22, %24 : vector<16x128xf32>
    %c0_11 = arith.constant 0 : index
    %c0_12 = arith.constant 0 : index
    %26 = vector.load %arg4[%c0_11, %c0_12] : memref<16x128xf32, #tpu.memory_space<vmem>>, vector<16x128xf32>
    tpu.vector_store %arg4[%c0_11, %c0_12], %25 {strides = array<i32>} : memref<16x128xf32, #tpu.memory_space<vmem>>, vector<16x128xf32>,
    return
  }
  func.func @transform_0(%arg0: i32) -> (i32, i32) {
    %c0_i32 = arith.constant 0 : i32
    %c0_i32_0 = arith.constant 0 : i32
    return %arg0, %c0_i32 : i32, i32
  }
  func.func @transform_1(%arg0: i32) -> (i32, i32) {
    %c0_i32 = arith.constant 0 : i32
    %c0_i32_0 = arith.constant 0 : i32
    %c0_i32_1 = arith.constant 0 : i32
    return %c0_i32, %c0_i32_0 : i32, i32
  }
  func.func @transform_2(%arg0: i32) -> (i32, i32) {
    %c0_i32 = arith.constant 0 : i32
    %c0_i32_0 = arith.constant 0 : i32
    %c0_i32_1 = arith.constant 0 : i32
    return %c0_i32, %c0_i32_0 : i32, i32
  }
  func.func @transform_3(%arg0: i32) -> (i32, i32) {
    %c0_i32 = arith.constant 0 : i32
    %c0_i32_0 = arith.constant 0 : i32
    return %arg0, %c0_i32 : i32, i32
  }
}

</mosaic_0001>

<bundles_post_ra>
// kernel: tpu_custom_call.1
= control target key start
LH: loop header
LB: loop body
LE: loop exit
PB: predicated region body
PF: predicated region fallthrough
CT: control target
= control target key end

     0   :  { %8 = vsyncpa [#allocation3], 0  ;;  %s443_s0 = inlined_call_operand.hbm [shape: f32[16,128], index: 0, kind: input, shape index: {}]   ;;  %s444_s1 = inlined_call_operand.hbm [shape: f32[128,128], index: 1, kind: input, shape index: {}]   ;;  %s445_s2 = inlined_call_operand.vmem [shape: f32[1,128], index: 2, kind: input, shape index: {}]   ;;  %s446_s3 = inlined_call_operand.hbm [shape: f32[16,128], index: 3, kind: output, shape index: {}]  }
   0x1   :  { %9 = vsyncpa [#allocation6], 0 }
   0x2   :  { %10 = vsyncpa [#allocation4], 0  ;;  %s358_s12 = smov [#allocation2]   ;;  %s286_s16 = scalar_lea.hbm %s443_s0, 256 }
   0x3   :  { %s16_s13 = sshll.u32 %s358_s12, 4  ;;  %p287_p0 = scmp.ne.s32.totalorder %s443_s0, %s286_s16  ;;  %s17_s13 = int_to_ptr.vmem [resolvable:$true] %s16_s13 }
   0x4   :  { %p290_p1 = scmp.lt.u32.totalorder %s286_s16, %s443_s0 }
   0x6   :  { %p292_p2 = pnand %p290_p1, %p287_p0 }
   0x8   :  { %295 = shalt.err (!%p292_p2)
}
   0x9   :  { %s296_s21 = scalar_lea.vmem %s17_s13, 256  ;;  %p301_p4 = scmp.lt.s32.totalorder %s17_s13, %s17_s13 }
   0xa   :  { %p297_p3 = scmp.ne.s32.totalorder %s17_s13, %s296_s21  ;;  %p302_p5 = scmp.lt.s32.totalorder %s296_s21, %s296_s21 }
   0xc   :  { %p303_p6 = por %p302_p5, %p301_p4 }
   0xe   :  { %p304_p7 = pnand %p303_p6, %p297_p3 }
  0x10   :  { %307 = shalt.err (!%p304_p7)
}
  0x11   :  { %s359_s22 = smov 128   ;;  %s360_s23 = smov 8  }
  0x12   :  { %22 = dma.hbm_to_vmem [thread:$0]  %s443_s0, 256, %s17_s13, [#allocation3], %s359_s22, %s359_s22, %s360_s23  }
  0x13   :  { %s361_s26 = smov [#allocation5]   ;;  %s308_s30 = scalar_lea.hbm %s444_s1, 2048 }
  0x14   :  { %s28_s27 = sshll.u32 %s361_s26, 4  ;;  %p309_p8 = scmp.ne.s32.totalorder %s444_s1, %s308_s30  ;;  %s29_s27 = int_to_ptr.vmem [resolvable:$true] %s28_s27 }
  0x15   :  { %p312_p9 = scmp.lt.u32.totalorder %s308_s30, %s444_s1 }
  0x17   :  { %p314_p10 = pnand %p312_p9, %p309_p8 }
  0x19   :  { %317 = shalt.err (!%p314_p10)
}
  0x1a   :  { %s318_s8 = scalar_lea.vmem %s29_s27, 2048  ;;  %p323_p12 = scmp.lt.s32.totalorder %s29_s27, %s29_s27 }
  0x1b   :  { %p319_p11 = scmp.ne.s32.totalorder %s29_s27, %s318_s8  ;;  %p324_p13 = scmp.lt.s32.totalorder %s318_s8, %s318_s8 }
  0x1d   :  { %p325_p0 = por %p324_p13, %p323_p12 }
  0x1f   :  { %p326_p1 = pnand %p325_p0, %p319_p11 }
  0x21   :  { %329 = shalt.err (!%p326_p1)
}
  0x22   :  { %34 = dma.hbm_to_vmem [thread:$0]  %s444_s1, 2048, %s29_s27, [#allocation6], %s359_s22, %s359_s22, %s360_s23  }
  0x23   :  { %352 = dma.done.wait [#allocation3], 256  }
  0x24   :  { %353 = vsyncadd [#allocation3], 4294967040 }
  0x25   :  { %354 = dma.done.wait [#allocation6], 2048  }
  0x26   :  { %355 = vsyncadd [#allocation6], 4294965248  ;;  %v413_v0 = vld [vmem:[#allocation2] sm:$0xff]  ;;  %v415_v1 = vld [vmem:[#allocation2 + $0x8] sm:$0xff]  ;;  %s362_s11 = smov [#allocation7]  }
  0x27   :  { %v73_v2 = vld [vmem:[#allocation5] sm:$0xff]  ;;  %45 = vadd.xlane.f32.xlu0 %v413_v0  ;;  %v49_v3 = vmul.f32 %v413_v0, %v413_v0  ;;  %v74_v4 = vld [vmem:[#allocation5 + $0x8] sm:$0xff]  ;;  %v75_v5 = vld [vmem:[#allocation5 + $0x10] sm:$0xff]  ;;  %v50_v9 = vmul.f32 %v415_v1, %v415_v1  ;;  %s178_s12 = sshll.u32 %s362_s11, 4  ;;  %s179_s12 = int_to_ptr.vmem [resolvable:$true] %s178_s12 }
  0x28   :  { %v76_v6 = vld [vmem:[#allocation5 + $0x18] sm:$0xff]  ;;  %v245_v7 = vpack.c.bf16 %v74_v4, %v73_v2  ;;  %v77_v10 = vld [vmem:[#allocation5 + $0x20] sm:$0xff]  ;;  %v78_v11 = vld [vmem:[#allocation5 + $0x28] sm:$0xff]  ;;  %s330_s13 = scalar_lea.vmem %s179_s12, 256  ;;  %p335_p3 = scmp.lt.s32.totalorder %s179_s12, %s179_s12 }
  0x29   :  { %v249_v8 = vpack.c.bf16 %v76_v6, %v75_v5  ;;  %51 = vadd.xlane.f32.xlu1 %v49_v3  ;;  %v253_v12 = vpack.c.bf16 %v78_v11, %v77_v10  ;;  %v79_v13 = vld [vmem:[#allocation5 + $0x30] sm:$0xff]  ;;  %v80_v14 = vld [vmem:[#allocation5 + $0x38] sm:$0xff]  ;;  %v81_v16 = vld [vmem:[#allocation5 + $0x40] sm:$0xff]  ;;  %p331_p2 = scmp.ne.s32.totalorder %s179_s12, %s330_s13  ;;  %p336_p4 = scmp.lt.s32.totalorder %s330_s13, %s330_s13 }
  0x2a   :  { %246 = vmatprep.subr.bf16.mxu0 %v245_v7  ;;  %v257_v15 = vpack.c.bf16 %v80_v14, %v79_v13  ;;  %v82_v17 = vld [vmem:[#allocation5 + $0x48] sm:$0xff]  ;;  %v83_v19 = vld [vmem:[#allocation5 + $0x50] sm:$0xff]  ;;  %v84_v20 = vld [vmem:[#allocation5 + $0x58] sm:$0xff] }
  0x2b   :  { %47 = vadd.xlane.f32.xlu0 %v415_v1  ;;  %248 = vmatpush3.bf16.msra.mxu0 %v245_v7  ;;  %v261_v18 = vpack.c.bf16 %v82_v17, %v81_v16  ;;  %v265_v21 = vpack.c.bf16 %v84_v20, %v83_v19  ;;  %v85_v22 = vld [vmem:[#allocation5 + $0x60] sm:$0xff]  ;;  %v86_v23 = vld [vmem:[#allocation5 + $0x68] sm:$0xff]  ;;  %v87_v24 = vld [vmem:[#allocation5 + $0x70] sm:$0xff]  ;;  %p337_p5 = por %p336_p4, %p335_p3 }
  0x2c   :  { %250 = vmatprep.subr.bf16.mxu0 %v249_v8  ;;  %v269_v25 = vpack.c.bf16 %v86_v23, %v85_v22  ;;  %v88_v26 = vld [vmem:[#allocation5 + $0x78] sm:$0xff]  ;;  %v191_v50 = vld [vmem:[%s445_s2] ss:$0 sm:$0xff] }
  0x2d   :  { %53 = vadd.xlane.f32.xlu1 %v50_v9  ;;  %v273_v27 = vpack.c.bf16 %v88_v26, %v87_v24  ;;  %p338_p6 = pnand %p337_p5, %p331_p2 }
  0x2f   :  { %252 = vmatpush3.bf16.msra.mxu0 %v249_v8 }
  0x30   :  { %254 = vmatprep.subr.bf16.mxu0 %v253_v12 }
  0x33   :  { %256 = vmatpush3.bf16.msra.mxu0 %v253_v12 }
  0x34   :  { %258 = vmatprep.subr.bf16.mxu0 %v257_v15 }
  0x37   :  { %260 = vmatpush3.bf16.msra.mxu0 %v257_v15 }
  0x38   :  { %262 = vmatprep.subr.bf16.mxu0 %v261_v18 }
  0x3b   :  { %264 = vmatpush3.bf16.msra.mxu0 %v261_v18 }
  0x3c   :  { %266 = vmatprep.subr.bf16.mxu0 %v265_v21 }
  0x3f   :  { %268 = vmatpush3.bf16.msra.mxu0 %v265_v21 }
  0x40   :  { %270 = vmatprep.subr.bf16.mxu0 %v269_v25 }
  0x43   :  { %272 = vmatpush3.bf16.msra.mxu0 %v269_v25 }
  0x44   :  { %274 = vmatprep.subr.bf16.mxu0 %v273_v27 }
  0x47   :  { %276 = vmatpush3.bf16.msra.mxu0 %v273_v27 }
  0xb4   :  { %v46_v28 = vpop.xlane.xlu0 %45 }
  0xb5   :  { %v55_v29 = vmul.f32 0.03125, %v46_v28 }
  0xb6   :  { %v52_v30 = vpop.xlane.xlu1 %51 }
  0xb7   :  { %v59_v31 = vmul.f32 %v55_v29, %v55_v29  ;;  %v57_v32 = vmul.f32 0.03125, %v52_v30  ;;  %v69_v44 = vsub.f32 %v413_v0, %v55_v29 }
  0xb8   :  { %v48_v33 = vpop.xlane.xlu0 %47 }
  0xb9   :  { %v61_v34 = vsub.f32 %v57_v32, %v59_v31  ;;  %v56_v35 = vmul.f32 0.03125, %v48_v33 }
  0xba   :  { %v54_v36 = vpop.xlane.xlu1 %53 }
  0xbb   :  { %v63_v37 = vmax.f32 %v61_v34, 0.0  ;;  %v60_v38 = vmul.f32 %v56_v35, %v56_v35  ;;  %v58_v39 = vmul.f32 0.03125, %v54_v36  ;;  %v70_v47 = vsub.f32 %v415_v1, %v56_v35 }
  0xbd   :  { %v65_v40 = vadd.f32 1e-05, %v63_v37  ;;  %v62_v41 = vsub.f32 %v58_v39, %v60_v38 }
  0xbf   :  { %282 = vrsqrt.f32 %v65_v40  ;;  %v64_v42 = vmax.f32 %v62_v41, 0.0 }
  0xc1   :  { %v66_v43 = vadd.f32 1e-05, %v64_v42 }
  0xc3   :  { %284 = vrsqrt.f32 %v66_v43 }
  0xc9   :  { %v283_v45 = vpop.eup %282 }
  0xca   :  { %v71_v46 = vmul.f32 %v283_v45, %v69_v44 }
  0xcc   :  { %242 = vmatprep.mubr.f32.mxu0 %v71_v46 }
  0xcd   :  { %v285_v48 = vpop.eup %284 }
  0xce   :  { %v72_v49 = vmul.f32 %v285_v48, %v70_v47 }
  0xd0   :  { %243 = vmatmul.mubr.f32.vlgmr.msra.gmra.mrb[0].mxu0 %v72_v49 }
 0x1a3   :  { %v244_v51 = vpop.f32.mrb[0].mxu0 }
 0x1a4   :  { %v168_v52 = vadd.f32 %v244_v51, %v191_v50  ;;  %v162_v53 = vpop.f32.mrb[1].mxu0 }
 0x1a5   :  { %v163_v54 = vadd.f32 %v191_v50, %v162_v53 }
 0x1a6   :  { %172 = vst [vmem:[#allocation7 + $0x8] sm:$0xff] %v168_v52 }
 0x1a7   :  { %171 = vst [vmem:[#allocation7] sm:$0xff] %v163_v54 }
 0x1a8   :  { %341 = shalt.err (!%p338_p6)
}
 0x1a9   :  { %s342_s2 = scalar_lea.hbm %s446_s3, 256 }
 0x1aa   :  { %p343_p7 = scmp.ne.s32.totalorder %s446_s3, %s342_s2  ;;  %p346_p8 = scmp.lt.u32.totalorder %s342_s2, %s446_s3 }
 0x1ac   :  { %p348_p9 = pnand %p346_p8, %p343_p7 }
 0x1ae   :  { %351 = shalt.err (!%p348_p9)
}
 0x1af   :  { %184 = dma.vmem_to_hbm [thread:$0]  %s179_s12, 256, %s446_s3, [#allocation4], %s359_s22, %s359_s22, %s360_s23  }
 0x1b0   :  { %356 = dma.done.wait [#allocation4], 256  }
 0x1b1   :  { %357 = vsyncadd [#allocation4], 4294967040 }
 0x1b2   :  { %188 = vsyncpa [#allocation3], 1 }
 0x1b3   :  { %189 = vsyncpa [#allocation6], 1 }
 0x1b4   :  { %190 = vsyncpa [#allocation4], 1 }

// kernel: tpu_custom_call.1
= control target key start
LH: loop header
LB: loop body
LE: loop exit
PB: predicated region body
PF: predicated region fallthrough
CT: control target
= control target key end

     0   :  { %8 = vsyncpa [#allocation3], 0  ;;  %s443_s0 = inlined_call_operand.hbm [shape: f32[16,128], index: 0, kind: input, shape index: {}]   ;;  %s444_s1 = inlined_call_operand.hbm [shape: f32[128,128], index: 1, kind: input, shape index: {}]   ;;  %s445_s2 = inlined_call_operand.vmem [shape: f32[1,128], index: 2, kind: input, shape index: {}]   ;;  %s446_s3 = inlined_call_operand.hbm [shape: f32[16,128], index: 3, kind: output, shape index: {}]  }
   0x1   :  { %9 = vsyncpa [#allocation6], 0 }
   0x2   :  { %10 = vsyncpa [#allocation4], 0  ;;  %s358_s12 = smov [#allocation2]   ;;  %s286_s16 = scalar_lea.hbm %s443_s0, 256 }
   0x3   :  { %s16_s13 = sshll.u32 %s358_s12, 4  ;;  %p287_p0 = scmp.ne.s32.totalorder %s443_s0, %s286_s16  ;;  %s17_s13 = int_to_ptr.vmem [resolvable:$true] %s16_s13 }
   0x4   :  { %p290_p1 = scmp.lt.u32.totalorder %s286_s16, %s443_s0 }
   0x6   :  { %p292_p2 = pnand %p290_p1, %p287_p0 }
   0x8   :  { %295 = shalt.err (!%p292_p2)
}
   0x9   :  { %s296_s21 = scalar_lea.vmem %s17_s13, 256  ;;  %p301_p4 = scmp.lt.s32.totalorder %s17_s13, %s17_s13 }
   0xa   :  { %p297_p3 = scmp.ne.s32.totalorder %s17_s13, %s296_s21  ;;  %p302_p5 = scmp.lt.s32.totalorder %s296_s21, %s296_s21 }
   0xc   :  { %p303_p6 = por %p302_p5, %p301_p4 }
   0xe   :  { %p304_p7 = pnand %p303_p6, %p297_p3 }
  0x10   :  { %307 = shalt.err (!%p304_p7)
}
  0x11   :  { %s359_s22 = smov 128   ;;  %s360_s23 = smov 8  }
  0x12   :  { %22 = dma.hbm_to_vmem [thread:$0]  %s443_s0, 256, %s17_s13, [#allocation3], %s359_s22, %s359_s22, %s360_s23  }
  0x13   :  { %s361_s26 = smov [#allocation5]   ;;  %s308_s30 = scalar_lea.hbm %s444_s1, 2048 }
  0x14   :  { %s28_s27 = sshll.u32 %s361_s26, 4  ;;  %p309_p8 = scmp.ne.s32.totalorder %s444_s1, %s308_s30  ;;  %s29_s27 = int_to_ptr.vmem [resolvable:$true] %s28_s27 }
  0x15   :  { %p312_p9 = scmp.lt.u32.totalorder %s308_s30, %s444_s1 }
  0x17   :  { %p314_p10 = pnand %p312_p9, %p309_p8 }
  0x19   :  { %317 = shalt.err (!%p314_p10)
}
  0x1a   :  { %s318_s8 = scalar_lea.vmem %s29_s27, 2048  ;;  %p323_p12 = scmp.lt.s32.totalorder %s29_s27, %s29_s27 }
  0x1b   :  { %p319_p11 = scmp.ne.s32.totalorder %s29_s27, %s318_s8  ;;  %p324_p13 = scmp.lt.s32.totalorder %s318_s8, %s318_s8 }
  0x1d   :  { %p325_p0 = por %p324_p13, %p323_p12 }
  0x1f   :  { %p326_p1 = pnand %p325_p0, %p319_p11 }
  0x21   :  { %329 = shalt.err (!%p326_p1)
}
  0x22   :  { %34 = dma.hbm_to_vmem [thread:$0]  %s444_s1, 2048, %s29_s27, [#allocation6], %s359_s22, %s359_s22, %s360_s23  }
  0x23   :  { %352 = dma.done.wait [#allocation3], 256  }
  0x24   :  { %353 = vsyncadd [#allocation3], 4294967040 }
  0x25   :  { %354 = dma.done.wait [#allocation6], 2048  }
  0x26   :  { %355 = vsyncadd [#allocation6], 4294965248  ;;  %v413_v0 = vld [vmem:[#allocation2] sm:$0xff]  ;;  %v415_v1 = vld [vmem:[#allocation2 + $0x8] sm:$0xff]  ;;  %s362_s11 = smov [#allocation7]  }
  0x27   :  { %v73_v2 = vld [vmem:[#allocation5] sm:$0xff]  ;;  %45 = vadd.xlane.f32.xlu0 %v413_v0  ;;  %v49_v3 = vmul.f32 %v413_v0, %v413_v0  ;;  %v74_v4 = vld [vmem:[#allocation5 + $0x8] sm:$0xff]  ;;  %v75_v5 = vld [vmem:[#allocation5 + $0x10] sm:$0xff]  ;;  %v50_v9 = vmul.f32 %v415_v1, %v415_v1  ;;  %s178_s12 = sshll.u32 %s362_s11, 4  ;;  %s179_s12 = int_to_ptr.vmem [resolvable:$true] %s178_s12 }
  0x28   :  { %v76_v6 = vld [vmem:[#allocation5 + $0x18] sm:$0xff]  ;;  %v245_v7 = vpack.c.bf16 %v74_v4, %v73_v2  ;;  %v77_v10 = vld [vmem:[#allocation5 + $0x20] sm:$0xff]  ;;  %v78_v11 = vld [vmem:[#allocation5 + $0x28] sm:$0xff]  ;;  %s330_s13 = scalar_lea.vmem %s179_s12, 256  ;;  %p335_p3 = scmp.lt.s32.totalorder %s179_s12, %s179_s12 }
  0x29   :  { %v249_v8 = vpack.c.bf16 %v76_v6, %v75_v5  ;;  %51 = vadd.xlane.f32.xlu1 %v49_v3  ;;  %v253_v12 = vpack.c.bf16 %v78_v11, %v77_v10  ;;  %v79_v13 = vld [vmem:[#allocation5 + $0x30] sm:$0xff]  ;;  %v80_v14 = vld [vmem:[#allocation5 + $0x38] sm:$0xff]  ;;  %v81_v16 = vld [vmem:[#allocation5 + $0x40] sm:$0xff]  ;;  %p331_p2 = scmp.ne.s32.totalorder %s179_s12, %s330_s13  ;;  %p336_p4 = scmp.lt.s32.totalorder %s330_s13, %s330_s13 }
  0x2a   :  { %246 = vmatprep.subr.bf16.mxu0 %v245_v7  ;;  %v257_v15 = vpack.c.bf16 %v80_v14, %v79_v13  ;;  %v82_v17 = vld [vmem:[#allocation5 + $0x48] sm:$0xff]  ;;  %v83_v19 = vld [vmem:[#allocation5 + $0x50] sm:$0xff]  ;;  %v84_v20 = vld [vmem:[#allocation5 + $0x58] sm:$0xff] }
  0x2b   :  { %47 = vadd.xlane.f32.xlu0 %v415_v1  ;;  %248 = vmatpush3.bf16.msra.mxu0 %v245_v7  ;;  %v261_v18 = vpack.c.bf16 %v82_v17, %v81_v16  ;;  %v265_v21 = vpack.c.bf16 %v84_v20, %v83_v19  ;;  %v85_v22 = vld [vmem:[#allocation5 + $0x60] sm:$0xff]  ;;  %v86_v23 = vld [vmem:[#allocation5 + $0x68] sm:$0xff]  ;;  %v87_v24 = vld [vmem:[#allocation5 + $0x70] sm:$0xff]  ;;  %p337_p5 = por %p336_p4, %p335_p3 }
  0x2c   :  { %250 = vmatprep.subr.bf16.mxu0 %v249_v8  ;;  %v269_v25 = vpack.c.bf16 %v86_v23, %v85_v22  ;;  %v88_v26 = vld [vmem:[#allocation5 + $0x78] sm:$0xff]  ;;  %v191_v50 = vld [vmem:[%s445_s2] ss:$0 sm:$0xff] }
  0x2d   :  { %53 = vadd.xlane.f32.xlu1 %v50_v9  ;;  %v273_v27 = vpack.c.bf16 %v88_v26, %v87_v24  ;;  %p338_p6 = pnand %p337_p5, %p331_p2 }
  0x2f   :  { %252 = vmatpush3.bf16.msra.mxu0 %v249_v8 }
  0x30   :  { %254 = vmatprep.subr.bf16.mxu0 %v253_v12 }
  0x33   :  { %256 = vmatpush3.bf16.msra.mxu0 %v253_v12 }
  0x34   :  { %258 = vmatprep.subr.bf16.mxu0 %v257_v15 }
  0x37   :  { %260 = vmatpush3.bf16.msra.mxu0 %v257_v15 }
  0x38   :  { %262 = vmatprep.subr.bf16.mxu0 %v261_v18 }
  0x3b   :  { %264 = vmatpush3.bf16.msra.mxu0 %v261_v18 }
  0x3c   :  { %266 = vmatprep.subr.bf16.mxu0 %v265_v21 }
  0x3f   :  { %268 = vmatpush3.bf16.msra.mxu0 %v265_v21 }
  0x40   :  { %270 = vmatprep.subr.bf16.mxu0 %v269_v25 }
  0x43   :  { %272 = vmatpush3.bf16.msra.mxu0 %v269_v25 }
  0x44   :  { %274 = vmatprep.subr.bf16.mxu0 %v273_v27 }
  0x47   :  { %276 = vmatpush3.bf16.msra.mxu0 %v273_v27 }
  0xb4   :  { %v46_v28 = vpop.xlane.xlu0 %45 }
  0xb5   :  { %v55_v29 = vmul.f32 0.03125, %v46_v28 }
  0xb6   :  { %v52_v30 = vpop.xlane.xlu1 %51 }
  0xb7   :  { %v59_v31 = vmul.f32 %v55_v29, %v55_v29  ;;  %v57_v32 = vmul.f32 0.03125, %v52_v30  ;;  %v69_v44 = vsub.f32 %v413_v0, %v55_v29 }
  0xb8   :  { %v48_v33 = vpop.xlane.xlu0 %47 }
  0xb9   :  { %v61_v34 = vsub.f32 %v57_v32, %v59_v31  ;;  %v56_v35 = vmul.f32 0.03125, %v48_v33 }
  0xba   :  { %v54_v36 = vpop.xlane.xlu1 %53 }
  0xbb   :  { %v63_v37 = vmax.f32 %v61_v34, 0.0  ;;  %v60_v38 = vmul.f32 %v56_v35, %v56_v35  ;;  %v58_v39 = vmul.f32 0.03125, %v54_v36  ;;  %v70_v47 = vsub.f32 %v415_v1, %v56_v35 }
  0xbd   :  { %v65_v40 = vadd.f32 1e-05, %v63_v37  ;;  %v62_v41 = vsub.f32 %v58_v39, %v60_v38 }
  0xbf   :  { %282 = vrsqrt.f32 %v65_v40  ;;  %v64_v42 = vmax.f32 %v62_v41, 0.0 }
  0xc1   :  { %v66_v43 = vadd.f32 1e-05, %v64_v42 }
  0xc3   :  { %284 = vrsqrt.f32 %v66_v43 }
  0xc9   :  { %v283_v45 = vpop.eup %282 }
  0xca   :  { %v71_v46 = vmul.f32 %v283_v45, %v69_v44 }
  0xcc   :  { %242 = vmatprep.mubr.f32.mxu0 %v71_v46 }
  0xcd   :  { %v285_v48 = vpop.eup %284 }
  0xce   :  { %v72_v49 = vmul.f32 %v285_v48, %v70_v47 }
  0xd0   :  { %243 = vmatmul.mubr.f32.vlgmr.msra.gmra.mrb[0].mxu0 %v72_v49 }
 0x1a3   :  { %v244_v51 = vpop.f32.mrb[0].mxu0 }
 0x1a4   :  { %v168_v52 = vadd.f32 %v244_v51, %v191_v50  ;;  %v162_v53 = vpop.f32.mrb[1].mxu0 }
 0x1a5   :  { %v163_v54 = vadd.f32 %v191_v50, %v162_v53 }
 0x1a6   :  { %172 = vst [vmem:[#allocation7 + $0x8] sm:$0xff] %v168_v52 }
 0x1a7   :  { %171 = vst [vmem:[#allocation7] sm:$0xff] %v163_v54 }
 0x1a8   :  { %341 = shalt.err (!%p338_p6)
}
 0x1a9   :  { %s342_s2 = scalar_lea.hbm %s446_s3, 256 }
 0x1aa   :  { %p343_p7 = scmp.ne.s32.totalorder %s446_s3, %s342_s2  ;;  %p346_p8 = scmp.lt.u32.totalorder %s342_s2, %s446_s3 }
 0x1ac   :  { %p348_p9 = pnand %p346_p8, %p343_p7 }
 0x1ae   :  { %351 = shalt.err (!%p348_p9)
}
 0x1af   :  { %184 = dma.vmem_to_hbm [thread:$0]  %s179_s12, 256, %s446_s3, [#allocation4], %s359_s22, %s359_s22, %s360_s23  }
 0x1b0   :  { %356 = dma.done.wait [#allocation4], 256  }
 0x1b1   :  { %357 = vsyncadd [#allocation4], 4294967040 }
 0x1b2   :  { %188 = vsyncpa [#allocation3], 1 }
 0x1b3   :  { %189 = vsyncpa [#allocation6], 1 }
 0x1b4   :  { %190 = vsyncpa [#allocation4], 1 }

</bundles_post_ra>
